<compile_context>
chip_gen: v5e
topology: v5e:2x2
jax: 0.10.0
libtpu: 0.0.40
codegen_flags: <defaults>
</compile_context>

<pallas_src>
import functools

import jax
import jax.numpy as jnp
from jax.experimental import pallas as pl
from jax.experimental.pallas import tpu as pltpu

LANES = 128        # vreg lane width
SUBLANES = 8       # f32 sublane height
BF16_ROW_ALIGN = 16  # bf16 sublane tiling (rows per packed tile)


def _round_up(x, m):
    return (x + m - 1) // m * m


# --------------------------------------------------------------------------
# Parameter packing (done once, outside the per-step forward call).
# --------------------------------------------------------------------------
def pack_params(params, min_action, max_action, *,
                state_dims, hidden_dims, action_dims):
    """Pack params into (w_packed bf16, vec_packed f32).

    w_packed row layout (segment starts 16-row aligned for bf16 tiling),
    width W = max(H_P, A_P):
      [0        : SA      ]  W1 zero-padded to [SA, W]
      [SA       : SA+H_P  ]  W2 zero-padded to [H_P, W]
      [SA+H_P   : SA+2H_P ]  W3 zero-padded to [H_P, W]
    vec_packed [8, W] f32, rows 0..4 = b1, b2, b3, min, max.
    """
    w1, b1, w2, b2, w3, b3 = params
    SA = _round_up(state_dims, BF16_ROW_ALIGN)
    H_P = _round_up(hidden_dims, LANES)
    A_P = _round_up(action_dims, LANES)
    W = max(H_P, A_P)

    def pad2(a, rows, cols):
        a = jnp.asarray(a, jnp.float32)
        r, c = a.shape
        return jnp.pad(a, ((0, rows - r), (0, cols - c)))

    w_packed = jnp.concatenate(
        [pad2(w1, SA, W), pad2(w2, H_P, W), pad2(w3, H_P, W)], axis=0
    ).astype(jnp.bfloat16)

    vec = jnp.zeros((SUBLANES, W), jnp.float32)
    vec = vec.at[0, :hidden_dims].set(jnp.asarray(b1, jnp.float32).reshape(-1))
    vec = vec.at[1, :hidden_dims].set(jnp.asarray(b2, jnp.float32).reshape(-1))
    vec = vec.at[2, :action_dims].set(jnp.asarray(b3, jnp.float32).reshape(-1))
    vec = vec.at[3, :action_dims].set(jnp.asarray(min_action, jnp.float32).reshape(-1))
    vec = vec.at[4, :action_dims].set(jnp.asarray(max_action, jnp.float32).reshape(-1))

    return w_packed, vec


# --------------------------------------------------------------------------
# Kernel
# --------------------------------------------------------------------------
def _actor_kernel(x_ref, w_ref, v_ref, o_ref, *, S, SA, H_P, A):
    # Batch tile of states, cast to bf16 for the MXU (accumulation stays f32).
    x = x_ref[...].astype(jnp.bfloat16)              # [TM, S]

    # Static slices of the resident packed parameters.
    w1 = w_ref[0:S, 0:H_P]                            # bf16 [S,   H_P]
    w2 = w_ref[SA:SA + H_P, 0:H_P]                    # bf16 [H_P, H_P]
    w3 = w_ref[SA + H_P:SA + 2 * H_P, 0:A]            # bf16 [H_P, A]
    b1 = v_ref[0:1, 0:H_P]                            # f32
    b2 = v_ref[1:2, 0:H_P]
    b3 = v_ref[2:3, 0:A]
    a_min = v_ref[3:4, 0:A]
    a_max = v_ref[4:5, 0:A]

    # Layer 1 / 2: Linear + ReLU  (bf16 operands, f32 MXU accumulation).
    h = jnp.maximum(jnp.dot(x, w1, preferred_element_type=jnp.float32) + b1, 0.0)
    h = jnp.maximum(
        jnp.dot(h.astype(jnp.bfloat16), w2, preferred_element_type=jnp.float32) + b2,
        0.0)

    # Layer 3: Linear + tanh, scale by max, clamp to [min, max] — only the
    # action_dims lanes are ever computed / stored.
    a = jnp.dot(h.astype(jnp.bfloat16), w3, preferred_element_type=jnp.float32) + b3
    a = jnp.tanh(a) * a_max
    a = jnp.clip(a, a_min, a_max)

    o_ref[...] = a.astype(o_ref.dtype)                # narrow [TM, A] store


# --------------------------------------------------------------------------
# Wrapper
# --------------------------------------------------------------------------
def actor_forward(states, w_packed, vec_packed, *,
                  state_dims, hidden_dims, action_dims, tile_m=2048):
    """states: [B, state_dims] f32.  Returns [B, action_dims] f32."""
    B, S = states.shape
    assert S == state_dims
    SA = _round_up(state_dims, BF16_ROW_ALIGN)
    H_P = _round_up(hidden_dims, LANES)
    A_P = _round_up(action_dims, LANES)
    W = max(H_P, A_P)
    ROWS = SA + 2 * H_P
    assert w_packed.shape == (ROWS, W) and w_packed.dtype == jnp.bfloat16
    assert vec_packed.shape == (SUBLANES, W) and vec_packed.dtype == jnp.float32

    x = states.astype(jnp.float32)   # no padding pass: block last dim == full dim

    # Batch tile: cap at tile_m (amortizes ~0.35us per-step overhead, still
    # tiny vs. VMEM on every generation), but never larger than ceil(B/2)
    # rounded to sublanes so the grid has >= 2 steps when possible and v7x's
    # second TensorCore gets work via dimension_semantics=("parallel",).
    TM = min(tile_m, max(SUBLANES, _round_up(pl.cdiv(B, 2), SUBLANES)))
    grid = (pl.cdiv(B, TM),)

    kernel = functools.partial(_actor_kernel, S=state_dims, SA=SA, H_P=H_P,
                               A=action_dims)

    def build(param_spec_extra):
        return pl.pallas_call(
            kernel,
            out_shape=jax.ShapeDtypeStruct((B, action_dims), jnp.float32),
            grid_spec=pltpu.PrefetchScalarGridSpec(
                num_scalar_prefetch=0,
                grid=grid,
                in_specs=[
                    # batch-tiled states; last dim == full array dim (legal)
                    pl.BlockSpec((TM, state_dims), lambda i: (i, 0)),
                    # resident bf16 weights (constant index_map -> 1 DMA)
                    pl.BlockSpec((ROWS, W), lambda i: (0, 0), **param_spec_extra),
                    # resident f32 biases / min / max
                    pl.BlockSpec((SUBLANES, W), lambda i: (0, 0), **param_spec_extra),
                ],
                # narrow output block; last dim == full array dim (legal)
                out_specs=pl.BlockSpec((TM, action_dims), lambda i: (i, 0)),
            ),
            compiler_params=pltpu.CompilerParams(
                dimension_semantics=("parallel",),   # v7x: shard batch over 2 TCs
            ),
        )

    try:
        # Params never change block index -> single-buffer them (saves VMEM).
        out = build(dict(pipeline_mode=pl.Buffered(1)))(x, w_packed, vec_packed)
    except Exception:
        # Fallback if this jax build rejects pipeline_mode / Buffered(1).
        out = build({})(x, w_packed, vec_packed)
    return out


# --------------------------------------------------------------------------
# Init + reference
# --------------------------------------------------------------------------
def init_params(key, state_dims, hidden_dims, action_dims):
    """Deterministic PyTorch-style Linear init (uniform(-1/sqrt(fan_in), +))."""
    def linear(key, fan_in, fan_out):
        kw, kb = jax.random.split(key)
        bound = 1.0 / jnp.sqrt(fan_in)
        # Stored as [in, out] (already transposed vs. torch's [out, in]).
        w = jax.random.uniform(kw, (fan_in, fan_out), jnp.float32, -bound, bound)
        b = jax.random.uniform(kb, (1, fan_out), jnp.float32, -bound, bound)
        return w, b

    k1, k2, k3 = jax.random.split(key, 3)
    w1, b1 = linear(k1, state_dims, hidden_dims)
    w2, b2 = linear(k2, hidden_dims, hidden_dims)
    w3, b3 = linear(k3, hidden_dims, action_dims)
    return (w1, b1, w2, b2, w3, b3)


def reference_forward(states, params, min_action, max_action):
    w1, b1, w2, b2, w3, b3 = params
    x = jnp.maximum(states @ w1 + b1, 0.0)
    x = jnp.maximum(x @ w2 + b2, 0.0)
    x = jnp.tanh(x @ w3 + b3) * max_action
    return jnp.clip(x, min_action, max_action)


if __name__ == "__main__":
    batch = 8
    state_dims = 16
    hidden_dims = 32
    action_dims = 8

    key = jax.random.PRNGKey(0)
    k_params, k_states = jax.random.split(key)

    params = init_params(k_params, state_dims, hidden_dims, action_dims)
    states = jax.random.normal(k_states, (batch, state_dims), jnp.float32)

    # Per-action-dim bounds.
    max_action = jnp.full((1, action_dims), 2.0, jnp.float32)
    min_action = jnp.full((1, action_dims), -2.0, jnp.float32)

    w_packed, vec_packed = pack_params(
        params, min_action, max_action,
        state_dims=state_dims, hidden_dims=hidden_dims, action_dims=action_dims)

    out = actor_forward(states, w_packed, vec_packed,
                        state_dims=state_dims, hidden_dims=hidden_dims,
                        action_dims=action_dims)
    out = jax.block_until_ready(out)

    ref = reference_forward(states, params, min_action, max_action)
    assert out.shape == (batch, action_dims)
    # bf16 matmul operands (f32 accumulation) -> loosened tolerance vs f32 ref.
    assert jnp.allclose(out, ref, atol=5e-2, rtol=5e-2), "mismatch vs JAX reference"

    print("KERNEL_OK")
</pallas_src>

<mosaic_0001>
module attributes {stable_mosaic.version = 11 : i64} {
  func.func @_actor_kernel(%arg0: i32, %arg1: memref<8x16xf32, #tpu.memory_space<vmem>>, %arg2: memref<272x128xbf16, #tpu.memory_space<vmem>>, %arg3: memref<8x128xf32, #tpu.memory_space<vmem>>, %arg4: memref<8x8xf32, #tpu.memory_space<vmem>>) attributes {dimension_semantics = [#tpu.dimension_semantics<parallel>], iteration_bounds = array<i64: 1>, scalar_prefetch = 0 : i64, scratch_operands = 0 : i64, tpu.core_type = #tpu.core_type<tc>, window_params = [{transform_indices = @transform_0, window_bounds = array<i64: 8, 16>}, {pipeline_mode = #tpu.pipeline_mode<synchronous>, transform_indices = @transform_1, window_bounds = array<i64: 272, 128>}, {pipeline_mode = #tpu.pipeline_mode<synchronous>, transform_indices = @transform_2, window_bounds = array<i64: 8, 128>}, {transform_indices = @transform_3, window_bounds = array<i64: 8, 8>}]} {
    %c0 = arith.constant 0 : index
    %c0_0 = arith.constant 0 : index
    %0 = vector.load %arg1[%c0, %c0_0] : memref<8x16xf32, #tpu.memory_space<vmem>>, vector<8x16xf32>
    %1 = arith.truncf %0 : vector<8x16xf32> to vector<8x16xbf16>
    %c0_1 = arith.constant 0 : index
    %c0_2 = arith.constant 0 : index
    %2 = vector.load %arg2[%c0_1, %c0_2] : memref<272x128xbf16, #tpu.memory_space<vmem>>, vector<16x128xbf16>
    %c16 = arith.constant 16 : index
    %c0_3 = arith.constant 0 : index
    %3 = vector.load %arg2[%c16, %c0_3] : memref<272x128xbf16, #tpu.memory_space<vmem>>, vector<128x128xbf16>
    %c144 = arith.constant 144 : index
    %c0_4 = arith.constant 0 : index
    %4 = vector.load %arg2[%c144, %c0_4] : memref<272x128xbf16, #tpu.memory_space<vmem>>, vector<128x8xbf16>
    %c0_5 = arith.constant 0 : index
    %c0_6 = arith.constant 0 : index
    %5 = vector.load %arg3[%c0_5, %c0_6] : memref<8x128xf32, #tpu.memory_space<vmem>>, vector<1x128xf32>
    %c1 = arith.constant 1 : index
    %c0_7 = arith.constant 0 : index
    %6 = vector.load %arg3[%c1, %c0_7] : memref<8x128xf32, #tpu.memory_space<vmem>>, vector<1x128xf32>
    %c2 = arith.constant 2 : index
    %c0_8 = arith.constant 0 : index
    %7 = vector.load %arg3[%c2, %c0_8] : memref<8x128xf32, #tpu.memory_space<vmem>>, vector<1x8xf32>
    %c3 = arith.constant 3 : index
    %c0_9 = arith.constant 0 : index
    %8 = vector.load %arg3[%c3, %c0_9] : memref<8x128xf32, #tpu.memory_space<vmem>>, vector<1x8xf32>
    %c4 = arith.constant 4 : index
    %c0_10 = arith.constant 0 : index
    %9 = vector.load %arg3[%c4, %c0_10] : memref<8x128xf32, #tpu.memory_space<vmem>>, vector<1x8xf32>
    %cst = arith.constant dense<0.000000e+00> : vector<8x128xf32>
    %10 = tpu.matmul %1, %2, %cst {dimension_numbers = #tpu.dot_dimension_numbers<[1], [0], [0], [1], [0, 0, 1, 1], [], []>} : vector<8x16xbf16>, vector<16x128xbf16>, vector<8x128xf32> -> vector<8x128xf32>
    %11 = vector.broadcast %5 : vector<1x128xf32> to vector<8x128xf32>
    %12 = arith.addf %10, %11 : vector<8x128xf32>
    %cst_11 = arith.constant 0.000000e+00 : f32
    %13 = vector.broadcast %cst_11 : f32 to vector<8x128xf32>
    %14 = arith.maximumf %12, %13 : vector<8x128xf32>
    %15 = arith.truncf %14 : vector<8x128xf32> to vector<8x128xbf16>
    %cst_12 = arith.constant dense<0.000000e+00> : vector<8x128xf32>
    %16 = tpu.matmul %15, %3, %cst_12 {dimension_numbers = #tpu.dot_dimension_numbers<[1], [0], [0], [1], [0, 0, 1, 1], [], []>} : vector<8x128xbf16>, vector<128x128xbf16>, vector<8x128xf32> -> vector<8x128xf32>
    %17 = vector.broadcast %6 : vector<1x128xf32> to vector<8x128xf32>
    %18 = arith.addf %16, %17 : vector<8x128xf32>
    %cst_13 = arith.constant 0.000000e+00 : f32
    %19 = vector.broadcast %cst_13 : f32 to vector<8x128xf32>
    %20 = arith.maximumf %18, %19 : vector<8x128xf32>
    %21 = arith.truncf %20 : vector<8x128xf32> to vector<8x128xbf16>
    %cst_14 = arith.constant dense<0.000000e+00> : vector<8x8xf32>
    %22 = tpu.matmul %21, %4, %cst_14 {dimension_numbers = #tpu.dot_dimension_numbers<[1], [0], [0], [1], [0, 0, 1, 1], [], []>} : vector<8x128xbf16>, vector<128x8xbf16>, vector<8x8xf32> -> vector<8x8xf32>
    %23 = vector.broadcast %7 : vector<1x8xf32> to vector<8x8xf32>
    %24 = arith.addf %22, %23 : vector<8x8xf32>
    %25 = math.tanh %24 : vector<8x8xf32>
    %26 = vector.broadcast %9 : vector<1x8xf32> to vector<8x8xf32>
    %27 = arith.mulf %25, %26 : vector<8x8xf32>
    %28 = vector.broadcast %8 : vector<1x8xf32> to vector<8x8xf32>
    %29 = arith.maximumf %28, %27 : vector<8x8xf32>
    %30 = vector.broadcast %9 : vector<1x8xf32> to vector<8x8xf32>
    %31 = arith.minimumf %30, %29 : vector<8x8xf32>
    %c0_15 = arith.constant 0 : index
    %c0_16 = arith.constant 0 : index
    %32 = vector.load %arg4[%c0_15, %c0_16] : memref<8x8xf32, #tpu.memory_space<vmem>>, vector<8x8xf32>
    tpu.vector_store %arg4[%c0_15, %c0_16], %31 {strides = array<i32>} : memref<8x8xf32, #tpu.memory_space<vmem>>, vector<8x8xf32>,
    return
  }
  func.func @transform_0(%arg0: i32) -> (i32, i32) {
    %c0_i32 = arith.constant 0 : i32
    %c0_i32_0 = arith.constant 0 : i32
    return %arg0, %c0_i32 : i32, i32
  }
  func.func @transform_1(%arg0: i32) -> (i32, i32) {
    %c0_i32 = arith.constant 0 : i32
    %c0_i32_0 = arith.constant 0 : i32
    %c0_i32_1 = arith.constant 0 : i32
    return %c0_i32, %c0_i32_0 : i32, i32
  }
  func.func @transform_2(%arg0: i32) -> (i32, i32) {
    %c0_i32 = arith.constant 0 : i32
    %c0_i32_0 = arith.constant 0 : i32
    %c0_i32_1 = arith.constant 0 : i32
    return %c0_i32, %c0_i32_0 : i32, i32
  }
  func.func @transform_3(%arg0: i32) -> (i32, i32) {
    %c0_i32 = arith.constant 0 : i32
    %c0_i32_0 = arith.constant 0 : i32
    return %arg0, %c0_i32 : i32, i32
  }
}

module attributes {stable_mosaic.version = 11 : i64} {
  func.func @_actor_kernel(%arg0: i32, %arg1: memref<8x16xf32, #tpu.memory_space<vmem>>, %arg2: memref<272x128xbf16, #tpu.memory_space<vmem>>, %arg3: memref<8x128xf32, #tpu.memory_space<vmem>>, %arg4: memref<8x8xf32, #tpu.memory_space<vmem>>) attributes {dimension_semantics = [#tpu.dimension_semantics<parallel>], iteration_bounds = array<i64: 1>, scalar_prefetch = 0 : i64, scratch_operands = 0 : i64, tpu.core_type = #tpu.core_type<tc>, window_params = [{transform_indices = @transform_0, window_bounds = array<i64: 8, 16>}, {pipeline_mode = #tpu.pipeline_mode<synchronous>, transform_indices = @transform_1, window_bounds = array<i64: 272, 128>}, {pipeline_mode = #tpu.pipeline_mode<synchronous>, transform_indices = @transform_2, window_bounds = array<i64: 8, 128>}, {transform_indices = @transform_3, window_bounds = array<i64: 8, 8>}]} {
    %c0 = arith.constant 0 : index
    %c0_0 = arith.constant 0 : index
    %0 = vector.load %arg1[%c0, %c0_0] : memref<8x16xf32, #tpu.memory_space<vmem>>, vector<8x16xf32>
    %1 = arith.truncf %0 : vector<8x16xf32> to vector<8x16xbf16>
    %c0_1 = arith.constant 0 : index
    %c0_2 = arith.constant 0 : index
    %2 = vector.load %arg2[%c0_1, %c0_2] : memref<272x128xbf16, #tpu.memory_space<vmem>>, vector<16x128xbf16>
    %c16 = arith.constant 16 : index
    %c0_3 = arith.constant 0 : index
    %3 = vector.load %arg2[%c16, %c0_3] : memref<272x128xbf16, #tpu.memory_space<vmem>>, vector<128x128xbf16>
    %c144 = arith.constant 144 : index
    %c0_4 = arith.constant 0 : index
    %4 = vector.load %arg2[%c144, %c0_4] : memref<272x128xbf16, #tpu.memory_space<vmem>>, vector<128x8xbf16>
    %c0_5 = arith.constant 0 : index
    %c0_6 = arith.constant 0 : index
    %5 = vector.load %arg3[%c0_5, %c0_6] : memref<8x128xf32, #tpu.memory_space<vmem>>, vector<1x128xf32>
    %c1 = arith.constant 1 : index
    %c0_7 = arith.constant 0 : index
    %6 = vector.load %arg3[%c1, %c0_7] : memref<8x128xf32, #tpu.memory_space<vmem>>, vector<1x128xf32>
    %c2 = arith.constant 2 : index
    %c0_8 = arith.constant 0 : index
    %7 = vector.load %arg3[%c2, %c0_8] : memref<8x128xf32, #tpu.memory_space<vmem>>, vector<1x8xf32>
    %c3 = arith.constant 3 : index
    %c0_9 = arith.constant 0 : index
    %8 = vector.load %arg3[%c3, %c0_9] : memref<8x128xf32, #tpu.memory_space<vmem>>, vector<1x8xf32>
    %c4 = arith.constant 4 : index
    %c0_10 = arith.constant 0 : index
    %9 = vector.load %arg3[%c4, %c0_10] : memref<8x128xf32, #tpu.memory_space<vmem>>, vector<1x8xf32>
    %cst = arith.constant dense<0.000000e+00> : vector<8x128xf32>
    %10 = tpu.matmul %1, %2, %cst {dimension_numbers = #tpu.dot_dimension_numbers<[1], [0], [0], [1], [0, 0, 1, 1], [], []>} : vector<8x16xbf16>, vector<16x128xbf16>, vector<8x128xf32> -> vector<8x128xf32>
    %11 = vector.broadcast %5 : vector<1x128xf32> to vector<8x128xf32>
    %12 = arith.addf %10, %11 : vector<8x128xf32>
    %cst_11 = arith.constant 0.000000e+00 : f32
    %13 = vector.broadcast %cst_11 : f32 to vector<8x128xf32>
    %14 = arith.maximumf %12, %13 : vector<8x128xf32>
    %15 = arith.truncf %14 : vector<8x128xf32> to vector<8x128xbf16>
    %cst_12 = arith.constant dense<0.000000e+00> : vector<8x128xf32>
    %16 = tpu.matmul %15, %3, %cst_12 {dimension_numbers = #tpu.dot_dimension_numbers<[1], [0], [0], [1], [0, 0, 1, 1], [], []>} : vector<8x128xbf16>, vector<128x128xbf16>, vector<8x128xf32> -> vector<8x128xf32>
    %17 = vector.broadcast %6 : vector<1x128xf32> to vector<8x128xf32>
    %18 = arith.addf %16, %17 : vector<8x128xf32>
    %cst_13 = arith.constant 0.000000e+00 : f32
    %19 = vector.broadcast %cst_13 : f32 to vector<8x128xf32>
    %20 = arith.maximumf %18, %19 : vector<8x128xf32>
    %21 = arith.truncf %20 : vector<8x128xf32> to vector<8x128xbf16>
    %cst_14 = arith.constant dense<0.000000e+00> : vector<8x8xf32>
    %22 = tpu.matmul %21, %4, %cst_14 {dimension_numbers = #tpu.dot_dimension_numbers<[1], [0], [0], [1], [0, 0, 1, 1], [], []>} : vector<8x128xbf16>, vector<128x8xbf16>, vector<8x8xf32> -> vector<8x8xf32>
    %23 = vector.broadcast %7 : vector<1x8xf32> to vector<8x8xf32>
    %24 = arith.addf %22, %23 : vector<8x8xf32>
    %25 = math.tanh %24 : vector<8x8xf32>
    %26 = vector.broadcast %9 : vector<1x8xf32> to vector<8x8xf32>
    %27 = arith.mulf %25, %26 : vector<8x8xf32>
    %28 = vector.broadcast %8 : vector<1x8xf32> to vector<8x8xf32>
    %29 = arith.maximumf %28, %27 : vector<8x8xf32>
    %30 = vector.broadcast %9 : vector<1x8xf32> to vector<8x8xf32>
    %31 = arith.minimumf %30, %29 : vector<8x8xf32>
    %c0_15 = arith.constant 0 : index
    %c0_16 = arith.constant 0 : index
    %32 = vector.load %arg4[%c0_15, %c0_16] : memref<8x8xf32, #tpu.memory_space<vmem>>, vector<8x8xf32>
    tpu.vector_store %arg4[%c0_15, %c0_16], %31 {strides = array<i32>} : memref<8x8xf32, #tpu.memory_space<vmem>>, vector<8x8xf32>,
    return
  }
  func.func @transform_0(%arg0: i32) -> (i32, i32) {
    %c0_i32 = arith.constant 0 : i32
    %c0_i32_0 = arith.constant 0 : i32
    return %arg0, %c0_i32 : i32, i32
  }
  func.func @transform_1(%arg0: i32) -> (i32, i32) {
    %c0_i32 = arith.constant 0 : i32
    %c0_i32_0 = arith.constant 0 : i32
    %c0_i32_1 = arith.constant 0 : i32
    return %c0_i32, %c0_i32_0 : i32, i32
  }
  func.func @transform_2(%arg0: i32) -> (i32, i32) {
    %c0_i32 = arith.constant 0 : i32
    %c0_i32_0 = arith.constant 0 : i32
    %c0_i32_1 = arith.constant 0 : i32
    return %c0_i32, %c0_i32_0 : i32, i32
  }
  func.func @transform_3(%arg0: i32) -> (i32, i32) {
    %c0_i32 = arith.constant 0 : i32
    %c0_i32_0 = arith.constant 0 : i32
    return %arg0, %c0_i32 : i32, i32
  }
}

</mosaic_0001>

<bundles_post_ra>
// kernel: tpu_custom_call.1
= control target key start
LH: loop header
LB: loop body
LE: loop exit
PB: predicated region body
PF: predicated region fallthrough
CT: control target
= control target key end

     0   :  { %8 = vsyncpa [#allocation3], 0  ;;  %s517_s0 = inlined_call_operand.hbm [shape: f32[8,16], index: 0, kind: input, shape index: {}]   ;;  %s518_s1 = inlined_call_operand.hbm [shape: bf16[272,128], index: 1, kind: input, shape index: {}]   ;;  %s519_s2 = inlined_call_operand.hbm [shape: f32[8,128], index: 2, kind: input, shape index: {}]   ;;  %s520_s3 = inlined_call_operand.hbm [shape: f32[8,8], index: 3, kind: output, shape index: {}]  }
   0x1   :  { %9 = vsyncpa [#allocation6], 0  ;;  %s26_s14 = sshll.u32 %s518_s1, 4  ;;  %s27_s14 = int_to_ptr.hbm [resolvable:$true] %s26_s14 }
   0x2   :  { %10 = vsyncpa [#allocation4], 0  ;;  %s479_s15 = smov [#allocation5]   ;;  %s16_s19 = sshll.u32 %s517_s0, 4  ;;  %s17_s19 = int_to_ptr.hbm [resolvable:$true] %s16_s19 }
   0x3   :  { %s28_s16 = sshll.u32 %s479_s15, 4  ;;  %s480_s20 = smov 64   ;;  %s29_s16 = int_to_ptr.vmem [resolvable:$true] %s28_s16 }
   0x4   :  { %s481_s21 = smov 4   ;;  %s482_s22 = smov [#allocation2]  }
   0x5   :  { %34 = dma.hbm_to_vmem [thread:$0]  %s27_s14, 2176, %s29_s16, [#allocation6], %s480_s20, %s480_s20, %s481_s21  }
   0x6   :  { %s18_s23 = sshll.u32 %s482_s22, 4  ;;  %s40_s26 = sshll.u32 %s519_s2, 4  ;;  %s19_s23 = int_to_ptr.vmem [resolvable:$true] %s18_s23  ;;  %s41_s26 = int_to_ptr.hbm [resolvable:$true] %s40_s26 }
   0x7   :  { %21 = dma.hbm_to_vmem [thread:$0]  %s17_s19, 128, %s19_s23, [#allocation3]  }
   0x8   :  { %s483_s1 = smov [#allocation7]  }
   0x9   :  { %s42_s27 = sshll.u32 %s483_s1, 4  ;;  %s43_s27 = int_to_ptr.vmem [resolvable:$true] %s42_s27 }
   0xa   :  { %45 = dma.hbm_to_vmem [thread:$0]  %s41_s26, 128, %s43_s27, [#allocation6]  }
   0xb   :  { %473 = dma.done.wait [#allocation3], 128  }
   0xc   :  { %474 = vsyncadd [#allocation3], 4294967168 }
   0xd   :  { %475 = dma.done.wait [#allocation6], 2304  }
   0xe   :  { %476 = vsyncadd [#allocation6], 4294964992  ;;  %v347_v0 = vld [vmem:[#allocation5] sm:$0xff]  ;;  %v59_v1 = vld [vmem:[#allocation2] sm:$0xff]  ;;  %vm107_vm0 = vcmask 130048   ;;  %s484_s0 = smov [#allocation8]  }
   0xf   :  { %v355_v2 = vld [vmem:[#allocation5 + $0x40] sm:$0xff]  ;;  %v60_v3 = vpack.c.bf16 %v59_v1, %v59_v1  ;;  %118 = vmatpush.bf16.msra.mxu0 %v347_v0  ;;  %v354_v4 = vld [vmem:[#allocation5 + $0x38] sm:$0xff]  ;;  %v353_v5 = vld [vmem:[#allocation5 + $0x30] sm:$0xff]  ;;  %s265_s2 = sshll.u32 %s484_s0, 4  ;;  %s267_s30 = sshll.u32 %s520_s3, 4  ;;  %vm258_vm1 = vcmask 64512   ;;  %s266_s2 = int_to_ptr.vmem [resolvable:$true] %s265_s2  ;;  %s268_s30 = int_to_ptr.hbm [resolvable:$true] %s267_s30 }
  0x10   :  { %175 = vmatpush.bf16.msra.mxu1 %v355_v2  ;;  %v352_v6 = vld [vmem:[#allocation5 + $0x28] sm:$0xff]  ;;  %v351_v7 = vld [vmem:[#allocation5 + $0x20] sm:$0xff]  ;;  %v350_v8 = vld [vmem:[#allocation5 + $0x18] sm:$0xff] }
  0x11   :  { %v349_v9 = vld [vmem:[#allocation5 + $0x10] sm:$0xff]  ;;  %v348_v10 = vld [vmem:[#allocation5 + $0x8] sm:$0xff]  ;;  %v363_v11 = vld [vmem:[#allocation5 + $0x80] sm:$0xff] }
  0x12   :  { %282 = vmatmul.msk.bf16.vlgmr.msra.gmra.mxu0 %vm107_vm0, %v60_v3  ;;  %239 = vmatpush.bf16.msra.mxu2 %v363_v11  ;;  %v362_v12 = vld [vmem:[#allocation5 + $0x78] sm:$0xff]  ;;  %v361_v13 = vld [vmem:[#allocation5 + $0x70] sm:$0xff]  ;;  %v360_v14 = vld [vmem:[#allocation5 + $0x68] sm:$0xff] }
  0x13   :  { %v359_v15 = vld [vmem:[#allocation5 + $0x60] sm:$0xff]  ;;  %v358_v16 = vld [vmem:[#allocation5 + $0x58] sm:$0xff]  ;;  %v370_v17 = vld [vmem:[#allocation7] ss:$0 sm:$0xff] }
  0x14   :  { %176 = vmatpush.bf16.msra.mxu1 %v354_v4  ;;  %v357_v23 = vld [vmem:[#allocation5 + $0x50] sm:$0xff]  ;;  %v356_v24 = vld [vmem:[#allocation5 + $0x48] sm:$0xff] }
  0x15   :  { %v371_v25 = vld [vmem:[#allocation7 + $0x1] ss:$0 sm:$0xff]  ;;  %v372_v31 = vld [vmem:[#allocation7 + $0x2] ss:$0 sm:$0xff]  ;;  %v373_v34 = vld [vmem:[#allocation7 + $0x4] ss:$0 sm:$0xff] }
  0x16   :  { %240 = vmatpush.bf16.msra.mxu2 %v362_v12  ;;  %v374_v36 = vld [vmem:[#allocation7 + $0x3] ss:$0 sm:$0xff] }
  0x18   :  { %177 = vmatpush.bf16.msra.mxu1 %v353_v5 }
  0x1a   :  { %241 = vmatpush.bf16.msra.mxu2 %v361_v13 }
  0x1c   :  { %178 = vmatpush.bf16.msra.mxu1 %v352_v6 }
  0x1e   :  { %242 = vmatpush.bf16.msra.mxu2 %v360_v14 }
  0x20   :  { %179 = vmatpush.bf16.msra.mxu1 %v351_v7 }
  0x22   :  { %243 = vmatpush.bf16.msra.mxu2 %v359_v15 }
  0x24   :  { %180 = vmatpush.bf16.msra.mxu1 %v350_v8 }
  0x26   :  { %244 = vmatpush.bf16.msra.mxu2 %v358_v16 }
  0x28   :  { %181 = vmatpush.bf16.msra.mxu1 %v349_v9 }
  0x2a   :  { %245 = vmatpush.bf16.msra.mxu2 %v357_v23 }
  0x2c   :  { %182 = vmatpush.bf16.msra.mxu1 %v348_v10 }
  0x2e   :  { %246 = vmatpush.bf16.msra.mxu2 %v356_v24 }
  0x8f   :  { %v120_v18 = vpop.f32.mrf.mxu0 }
  0x90   :  { %v121_v19 = vadd.f32 %v370_v17, %v120_v18 }
  0x92   :  { %v124_v20 = vmax.f32 %v121_v19, 0.0 }
  0x94   :  { %v125_v21 = vpack.c.bf16 %v124_v20, %v124_v20 }
  0x96   :  { %183 = vmatmul.bf16.vlgmr.msra.gmra.mxu1 %v125_v21 }
  0x97   :  { %v122_v22 = vpop.f32.mrf.mxu0 }
 0x113   :  { %v184_v26 = vpop.f32.mrf.mxu1 }
 0x114   :  { %v185_v27 = vadd.f32 %v371_v25, %v184_v26 }
 0x116   :  { %v188_v28 = vmax.f32 %v185_v27, 0.0 }
 0x118   :  { %v189_v29 = vpack.c.bf16 %v188_v28, %v188_v28 }
 0x11a   :  { %247 = vmatmul.bf16.vlgmr.msra.gmra.mxu2 %v189_v29 }
 0x11b   :  { %v186_v30 = vpop.f32.mrf.mxu1 }
 0x19d   :  { %v248_v32 = vpop.f32.mrf.mxu2 }
 0x19e   :  { %v249_v33 = vadd.f32 %v372_v31, %v248_v32 }
 0x1a0   :  { %375 = vtanh.f32 %v249_v33 }
 0x1a5   :  { %v250_v35 = vpop.f32.mrf.mxu2 }
 0x1a6   :  { %v376_v37 = vpop.eup %375 }
 0x1a7   :  { %v254_v38 = vmul.f32 %v376_v37, %v373_v34 }
 0x1a9   :  { %v256_v39 = vmax.f32 %v374_v36, %v254_v38 }
 0x1ab   :  { %v257_v40 = vmin.f32 %v373_v34, %v256_v39 }
 0x1ad   :  { %259 = vst.msk [vmem:[#allocation8] sm:$0xff] %vm258_vm1, %v257_v40 }
 0x1ae   :  { %270 = dma.vmem_to_hbm [thread:$0]  %s266_s2, 128, %s268_s30, [#allocation4]  }
 0x1af   :  { %477 = dma.done.wait [#allocation4], 128  }
 0x1b0   :  { %478 = vsyncadd [#allocation4], 4294967168 }
 0x1b1   :  { %275 = vsyncpa [#allocation3], 1 }
 0x1b2   :  { %276 = vsyncpa [#allocation6], 1 }
 0x1b3   :  { %277 = vsyncpa [#allocation4], 1 }

// kernel: tpu_custom_call.1
= control target key start
LH: loop header
LB: loop body
LE: loop exit
PB: predicated region body
PF: predicated region fallthrough
CT: control target
= control target key end

     0   :  { %8 = vsyncpa [#allocation3], 0  ;;  %s517_s0 = inlined_call_operand.hbm [shape: f32[8,16], index: 0, kind: input, shape index: {}]   ;;  %s518_s1 = inlined_call_operand.hbm [shape: bf16[272,128], index: 1, kind: input, shape index: {}]   ;;  %s519_s2 = inlined_call_operand.hbm [shape: f32[8,128], index: 2, kind: input, shape index: {}]   ;;  %s520_s3 = inlined_call_operand.hbm [shape: f32[8,8], index: 3, kind: output, shape index: {}]  }
   0x1   :  { %9 = vsyncpa [#allocation6], 0  ;;  %s26_s14 = sshll.u32 %s518_s1, 4  ;;  %s27_s14 = int_to_ptr.hbm [resolvable:$true] %s26_s14 }
   0x2   :  { %10 = vsyncpa [#allocation4], 0  ;;  %s479_s15 = smov [#allocation5]   ;;  %s16_s19 = sshll.u32 %s517_s0, 4  ;;  %s17_s19 = int_to_ptr.hbm [resolvable:$true] %s16_s19 }
   0x3   :  { %s28_s16 = sshll.u32 %s479_s15, 4  ;;  %s480_s20 = smov 64   ;;  %s29_s16 = int_to_ptr.vmem [resolvable:$true] %s28_s16 }
   0x4   :  { %s481_s21 = smov 4   ;;  %s482_s22 = smov [#allocation2]  }
   0x5   :  { %34 = dma.hbm_to_vmem [thread:$0]  %s27_s14, 2176, %s29_s16, [#allocation6], %s480_s20, %s480_s20, %s481_s21  }
   0x6   :  { %s18_s23 = sshll.u32 %s482_s22, 4  ;;  %s40_s26 = sshll.u32 %s519_s2, 4  ;;  %s19_s23 = int_to_ptr.vmem [resolvable:$true] %s18_s23  ;;  %s41_s26 = int_to_ptr.hbm [resolvable:$true] %s40_s26 }
   0x7   :  { %21 = dma.hbm_to_vmem [thread:$0]  %s17_s19, 128, %s19_s23, [#allocation3]  }
   0x8   :  { %s483_s1 = smov [#allocation7]  }
   0x9   :  { %s42_s27 = sshll.u32 %s483_s1, 4  ;;  %s43_s27 = int_to_ptr.vmem [resolvable:$true] %s42_s27 }
   0xa   :  { %45 = dma.hbm_to_vmem [thread:$0]  %s41_s26, 128, %s43_s27, [#allocation6]  }
   0xb   :  { %473 = dma.done.wait [#allocation3], 128  }
   0xc   :  { %474 = vsyncadd [#allocation3], 4294967168 }
   0xd   :  { %475 = dma.done.wait [#allocation6], 2304  }
   0xe   :  { %476 = vsyncadd [#allocation6], 4294964992  ;;  %v347_v0 = vld [vmem:[#allocation5] sm:$0xff]  ;;  %v59_v1 = vld [vmem:[#allocation2] sm:$0xff]  ;;  %vm107_vm0 = vcmask 130048   ;;  %s484_s0 = smov [#allocation8]  }
   0xf   :  { %v355_v2 = vld [vmem:[#allocation5 + $0x40] sm:$0xff]  ;;  %v60_v3 = vpack.c.bf16 %v59_v1, %v59_v1  ;;  %118 = vmatpush.bf16.msra.mxu0 %v347_v0  ;;  %v354_v4 = vld [vmem:[#allocation5 + $0x38] sm:$0xff]  ;;  %v353_v5 = vld [vmem:[#allocation5 + $0x30] sm:$0xff]  ;;  %s265_s2 = sshll.u32 %s484_s0, 4  ;;  %s267_s30 = sshll.u32 %s520_s3, 4  ;;  %vm258_vm1 = vcmask 64512   ;;  %s266_s2 = int_to_ptr.vmem [resolvable:$true] %s265_s2  ;;  %s268_s30 = int_to_ptr.hbm [resolvable:$true] %s267_s30 }
  0x10   :  { %175 = vmatpush.bf16.msra.mxu1 %v355_v2  ;;  %v352_v6 = vld [vmem:[#allocation5 + $0x28] sm:$0xff]  ;;  %v351_v7 = vld [vmem:[#allocation5 + $0x20] sm:$0xff]  ;;  %v350_v8 = vld [vmem:[#allocation5 + $0x18] sm:$0xff] }
  0x11   :  { %v349_v9 = vld [vmem:[#allocation5 + $0x10] sm:$0xff]  ;;  %v348_v10 = vld [vmem:[#allocation5 + $0x8] sm:$0xff]  ;;  %v363_v11 = vld [vmem:[#allocation5 + $0x80] sm:$0xff] }
  0x12   :  { %282 = vmatmul.msk.bf16.vlgmr.msra.gmra.mxu0 %vm107_vm0, %v60_v3  ;;  %239 = vmatpush.bf16.msra.mxu2 %v363_v11  ;;  %v362_v12 = vld [vmem:[#allocation5 + $0x78] sm:$0xff]  ;;  %v361_v13 = vld [vmem:[#allocation5 + $0x70] sm:$0xff]  ;;  %v360_v14 = vld [vmem:[#allocation5 + $0x68] sm:$0xff] }
  0x13   :  { %v359_v15 = vld [vmem:[#allocation5 + $0x60] sm:$0xff]  ;;  %v358_v16 = vld [vmem:[#allocation5 + $0x58] sm:$0xff]  ;;  %v370_v17 = vld [vmem:[#allocation7] ss:$0 sm:$0xff] }
  0x14   :  { %176 = vmatpush.bf16.msra.mxu1 %v354_v4  ;;  %v357_v23 = vld [vmem:[#allocation5 + $0x50] sm:$0xff]  ;;  %v356_v24 = vld [vmem:[#allocation5 + $0x48] sm:$0xff] }
  0x15   :  { %v371_v25 = vld [vmem:[#allocation7 + $0x1] ss:$0 sm:$0xff]  ;;  %v372_v31 = vld [vmem:[#allocation7 + $0x2] ss:$0 sm:$0xff]  ;;  %v373_v34 = vld [vmem:[#allocation7 + $0x4] ss:$0 sm:$0xff] }
  0x16   :  { %240 = vmatpush.bf16.msra.mxu2 %v362_v12  ;;  %v374_v36 = vld [vmem:[#allocation7 + $0x3] ss:$0 sm:$0xff] }
  0x18   :  { %177 = vmatpush.bf16.msra.mxu1 %v353_v5 }
  0x1a   :  { %241 = vmatpush.bf16.msra.mxu2 %v361_v13 }
  0x1c   :  { %178 = vmatpush.bf16.msra.mxu1 %v352_v6 }
  0x1e   :  { %242 = vmatpush.bf16.msra.mxu2 %v360_v14 }
  0x20   :  { %179 = vmatpush.bf16.msra.mxu1 %v351_v7 }
  0x22   :  { %243 = vmatpush.bf16.msra.mxu2 %v359_v15 }
  0x24   :  { %180 = vmatpush.bf16.msra.mxu1 %v350_v8 }
  0x26   :  { %244 = vmatpush.bf16.msra.mxu2 %v358_v16 }
  0x28   :  { %181 = vmatpush.bf16.msra.mxu1 %v349_v9 }
  0x2a   :  { %245 = vmatpush.bf16.msra.mxu2 %v357_v23 }
  0x2c   :  { %182 = vmatpush.bf16.msra.mxu1 %v348_v10 }
  0x2e   :  { %246 = vmatpush.bf16.msra.mxu2 %v356_v24 }
  0x8f   :  { %v120_v18 = vpop.f32.mrf.mxu0 }
  0x90   :  { %v121_v19 = vadd.f32 %v370_v17, %v120_v18 }
  0x92   :  { %v124_v20 = vmax.f32 %v121_v19, 0.0 }
  0x94   :  { %v125_v21 = vpack.c.bf16 %v124_v20, %v124_v20 }
  0x96   :  { %183 = vmatmul.bf16.vlgmr.msra.gmra.mxu1 %v125_v21 }
  0x97   :  { %v122_v22 = vpop.f32.mrf.mxu0 }
 0x113   :  { %v184_v26 = vpop.f32.mrf.mxu1 }
 0x114   :  { %v185_v27 = vadd.f32 %v371_v25, %v184_v26 }
 0x116   :  { %v188_v28 = vmax.f32 %v185_v27, 0.0 }
 0x118   :  { %v189_v29 = vpack.c.bf16 %v188_v28, %v188_v28 }
 0x11a   :  { %247 = vmatmul.bf16.vlgmr.msra.gmra.mxu2 %v189_v29 }
 0x11b   :  { %v186_v30 = vpop.f32.mrf.mxu1 }
 0x19d   :  { %v248_v32 = vpop.f32.mrf.mxu2 }
 0x19e   :  { %v249_v33 = vadd.f32 %v372_v31, %v248_v32 }
 0x1a0   :  { %375 = vtanh.f32 %v249_v33 }
 0x1a5   :  { %v250_v35 = vpop.f32.mrf.mxu2 }
 0x1a6   :  { %v376_v37 = vpop.eup %375 }
 0x1a7   :  { %v254_v38 = vmul.f32 %v376_v37, %v373_v34 }
 0x1a9   :  { %v256_v39 = vmax.f32 %v374_v36, %v254_v38 }
 0x1ab   :  { %v257_v40 = vmin.f32 %v373_v34, %v256_v39 }
 0x1ad   :  { %259 = vst.msk [vmem:[#allocation8] sm:$0xff] %vm258_vm1, %v257_v40 }
 0x1ae   :  { %270 = dma.vmem_to_hbm [thread:$0]  %s266_s2, 128, %s268_s30, [#allocation4]  }
 0x1af   :  { %477 = dma.done.wait [#allocation4], 128  }
 0x1b0   :  { %478 = vsyncadd [#allocation4], 4294967168 }
 0x1b1   :  { %275 = vsyncpa [#allocation3], 1 }
 0x1b2   :  { %276 = vsyncpa [#allocation6], 1 }
 0x1b3   :  { %277 = vsyncpa [#allocation4], 1 }

</bundles_post_ra>
